<compile_context>
chip_gen: v7x
topology: tpu7x:2x2x1
jax: 0.10.0
libtpu: 0.0.40
codegen_flags: <defaults>
</compile_context>

<pallas_src>
import functools

import jax
import jax.numpy as jnp
from jax import lax
from jax.experimental import pallas as pl
from jax.experimental.pallas import tpu as pltpu


def _round_up(x, m):
    return (x + m - 1) // m * m


def _cdiv(a, b):
    return (a + b - 1) // b


def elasticnet_fwd_kernel(xc_ref, xn_ref, s_ref, b_ref, o_ref, *,
                          n_cats, max_card, k_pad):
    """One batch tile, feature-major orientation.

    xc_ref : [n_cats, TB]       int32 category ids
    xn_ref : [n_num_pad, TB]    f32 numeric features (zero-padded rows)
    s_ref  : [out_dim, K_total] f32 fused weight (cat rows, then numeric rows)
    b_ref  : [out_dim, 1]       f32 bias
    o_ref  : [out_dim, TB]      f32 compact output tile (no 128-lane padding)
    """
    tb = xc_ref.shape[1]
    x_cat = xc_ref[...]                                   # [n_cats, TB]

    # Flat one-hot over all categories, built transposed ([k_pad, TB]) so the
    # single matmul below directly produces the compact [out_dim, TB] output.
    # Row r matches (category i, code c) with r = i*max_card + c; per-category
    # match sets are disjoint, so boolean OR is exact.  Out-of-range ids match
    # no row (-> zero contribution).
    row = lax.broadcasted_iota(jnp.int32, (k_pad, tb), 0)
    onehot = None
    for i in range(n_cats):
        fid = x_cat[i:i + 1, :] + i * max_card            # [1, TB]
        m = (row == fid)                                  # [k_pad, TB] bool
        onehot = m if onehot is None else (onehot | m)

    # Stack numeric features under the one-hot (k_pad is a multiple of 8, so
    # the concat is sublane-aligned) -> single fused MXU matmul.
    lhs = jnp.concatenate([onehot.astype(jnp.float32), xn_ref[...]], axis=0)
    acc = jnp.dot(s_ref[...], lhs, preferred_element_type=jnp.float32)
    o_ref[...] = acc + b_ref[...]


def prepare_params(emb_tables, weight, bias, *, n_cats, n_embed):
    """Fold embedding tables into the linear weight and pack everything into a
    single fused, transposed weight matrix.  Call ONCE per parameter set.

    emb_tables : [n_cats, max_card, n_embed] f32 (rows >= cardinality are 0)
    weight     : [out_dim, input_size]  (torch nn.Linear layout)
    bias       : [out_dim]
    Returns:
      s_t   : [out_dim, k_pad + n_num_pad]  fused weight, row blocks:
              rows [0, n_cats*max_card)  -> E_i[c] @ W_cat_i
              rows [k_pad, k_pad+n_num)  -> W_num
      b_col : [out_dim, 1]
    """
    assert n_cats >= 1
    max_card = emb_tables.shape[1]
    out_dim, input_size = weight.shape
    n_num = input_size - n_cats * n_embed

    w_t = weight.T.astype(jnp.float32)                        # [input_size, out_dim]
    w_cat = w_t[:n_cats * n_embed].reshape(n_cats, n_embed, out_dim)
    w_num = w_t[n_cats * n_embed:]                            # [n_num, out_dim]

    # S[i, c, :] = emb_tables[i, c, :] @ W_cat_i   (fused per-code rows).
    s = jnp.einsum('ice,ied->icd', emb_tables.astype(jnp.float32), w_cat)
    s = s.reshape(n_cats * max_card, out_dim)

    k_pad = _round_up(n_cats * max_card, 128)    # adaptive K alignment (not 256)
    n_num_pad = _round_up(max(n_num, 1), 8)

    s_total = jnp.zeros((k_pad + n_num_pad, out_dim), jnp.float32)
    s_total = s_total.at[:n_cats * max_card, :].set(s)
    if n_num > 0:
        s_total = s_total.at[k_pad:k_pad + n_num, :].set(w_num)
    b_col = bias.astype(jnp.float32).reshape(out_dim, 1)
    return s_total.T, b_col


def _choose_tile(batch, block_b):
    """Pick (tb, padded_rows).  Multi-step tiles are multiples of 128 (lane
    dense, (8,128)-rule compliant); a single step covers the whole batch
    (rounded to 8 rows).  batch >= 256 forces >= 2 grid steps for v7x's
    second TensorCore."""
    if batch < 256:
        tb = _round_up(batch, 8)
        return tb, tb
    n_steps = max(2, _cdiv(batch, block_b))
    tb = min(_round_up(block_b, 128), _round_up(_cdiv(batch, n_steps), 128))
    b_rows = _round_up(batch, tb)
    return tb, b_rows


@functools.partial(jax.jit, static_argnames=("n_cats", "max_card", "block_b"))
def elasticnet_forward(x, s_t, b_col, *, n_cats, max_card, block_b=1024):
    """x: [B, n_cats + n_num] f32; first n_cats columns hold category ids
    (carried as float, exact for ids < 2**24).  Returns [B, out_dim] f32."""
    batch, n_feat = x.shape
    out_dim, k_total = s_t.shape
    n_num = n_feat - n_cats
    n_num_pad = _round_up(max(n_num, 1), 8)
    k_pad = k_total - n_num_pad

    tb, b_rows = _choose_tile(batch, block_b)
    grid = (b_rows // tb,)

    x = x.astype(jnp.float32)
    # Pre-split + transpose in XLA (free layout plumbing): the kernel sees
    # clean int32 / f32 feature-major blocks with a lane-dense batch axis.
    x_cat_t = jnp.pad(x[:, :n_cats].astype(jnp.int32).T,
                      ((0, 0), (0, b_rows - batch)))                 # [n_cats, b_rows]
    x_num_t = jnp.pad(x[:, n_cats:].T,
                      ((0, n_num_pad - n_num), (0, b_rows - batch)))  # [n_num_pad, b_rows]

    kernel = functools.partial(elasticnet_fwd_kernel, n_cats=n_cats,
                               max_card=max_card, k_pad=k_pad)

    # Right-sized VMEM limit from the actual block footprint (double-buffered
    # io tiles + one-hot / concat intermediates + resident weights), x2 slack.
    vmem_est = 4 * (k_total * tb + k_pad * tb
                    + 2 * tb * (n_cats + n_num_pad + out_dim)
                    + 2 * (out_dim * k_total + out_dim))
    vmem_limit = int(min(64 * 1024 * 1024, max(4 * 1024 * 1024, 2 * vmem_est)))

    out = pl.pallas_call(
        kernel,
        out_shape=jax.ShapeDtypeStruct((out_dim, b_rows), jnp.float32),
        grid=grid,
        in_specs=[
            pl.BlockSpec((n_cats, tb), lambda i: (0, i)),        # ids: streamed
            pl.BlockSpec((n_num_pad, tb), lambda i: (0, i)),     # numerics: streamed
            pl.BlockSpec((out_dim, k_total), lambda i: (0, 0)),  # fused W: resident
            pl.BlockSpec((out_dim, 1), lambda i: (0, 0)),        # bias: resident
        ],
        out_specs=pl.BlockSpec((out_dim, tb), lambda i: (0, i)),
        compiler_params=pltpu.CompilerParams(
            dimension_semantics=("parallel",),                    # megacore / v7x
            vmem_limit_bytes=vmem_limit,
        ),
    )(x_cat_t, x_num_t, s_t, b_col)

    # Compact output: only out_dim * batch elements come back from HBM.
    return out[:, :batch].T


def reference_forward(x, emb_tables, weight, bias, *, n_cats):
    """Pure-JAX reference mirroring the PyTorch forward (for verification)."""
    x_cat = x[:, :n_cats].astype(jnp.int32)
    x_num = x[:, n_cats:]
    embedded = [emb_tables[i][x_cat[:, i]] for i in range(n_cats)]
    x_embed = jnp.concatenate(embedded, axis=1)
    x_comb = jnp.concatenate([x_embed, x_num], axis=1)
    return x_comb @ weight.T + bias


def _build_case(key, cat_cardinalities, n_embed, n_num, out_dim, batch):
    n_cats = len(cat_cardinalities)
    input_size = n_cats * n_embed + n_num
    max_card = max(cat_cardinalities)
    k_emb, k_w, k_b, k_idx, k_num = jax.random.split(key, 5)

    # stacked, zero-padded embedding tables: [n_cats, max_card, n_embed]
    emb_tables = jnp.zeros((n_cats, max_card, n_embed), jnp.float32)
    emb_keys = jax.random.split(k_emb, n_cats)
    for i, card in enumerate(cat_cardinalities):
        tbl = jax.random.normal(emb_keys[i], (card, n_embed), jnp.float32)
        emb_tables = emb_tables.at[i, :card, :].set(tbl)

    # Linear params (torch layout: weight [out_dim, input_size], bias [out_dim])
    bound = 1.0 / (input_size ** 0.5)
    weight = jax.random.uniform(k_w, (out_dim, input_size), jnp.float32,
                                minval=-bound, maxval=bound)
    bias = jax.random.uniform(k_b, (out_dim,), jnp.float32,
                              minval=-bound, maxval=bound)

    # x: [B, n_cats + n_num]; first n_cats columns are category ids (as float)
    cat_ids = jnp.stack(
        [jax.random.randint(jax.random.fold_in(k_idx, i), (batch,), 0, card)
         for i, card in enumerate(cat_cardinalities)], axis=1).astype(jnp.float32)
    x_num = jax.random.normal(k_num, (batch, n_num), jnp.float32)
    x = jnp.concatenate([cat_ids, x_num], axis=1)
    return x, emb_tables, weight, bias, n_cats, max_card


if __name__ == "__main__":
    key = jax.random.PRNGKey(0)
    k1, k2 = jax.random.split(key)

    cases = [
        # (cat_cardinalities, n_embed, n_num, out_dim, batch)
        ([10, 7, 5], 4, 6, 1, 8),      # module defaults, tiny batch, 1 grid step
        ([6, 4],     3, 5, 3, 300),    # multi-step parallel grid, out_dim > 1
    ]
    for case_key, (cards, n_embed, n_num, out_dim, batch) in zip((k1, k2), cases):
        x, emb_tables, weight, bias, n_cats, max_card = _build_case(
            case_key, cards, n_embed, n_num, out_dim, batch)

        # one-time parameter fusion (hoisted out of the per-call path)
        s_t, b_col = prepare_params(emb_tables, weight, bias,
                                    n_cats=n_cats, n_embed=n_embed)

        out = elasticnet_forward(x, s_t, b_col,
                                 n_cats=n_cats, max_card=max_card)
        out = jax.block_until_ready(out)

        ref = reference_forward(x, emb_tables, weight, bias, n_cats=n_cats)
        assert out.shape == (batch, out_dim)
        assert jnp.allclose(out, ref, atol=1e-5, rtol=1e-5), "mismatch vs reference"

    print("KERNEL_OK")
</pallas_src>

<mosaic_0001>
module attributes {stable_mosaic.version = 11 : i64} {
  func.func @elasticnet_fwd_kernel(%arg0: i32, %arg1: memref<3x8xi32, #tpu.memory_space<vmem>>, %arg2: memref<8x8xf32, #tpu.memory_space<vmem>>, %arg3: memref<1x136xf32, #tpu.memory_space<vmem>>, %arg4: memref<1x1xf32, #tpu.memory_space<vmem>>, %arg5: memref<1x8xf32, #tpu.memory_space<vmem>>) attributes {dimension_semantics = [#tpu.dimension_semantics<parallel>], iteration_bounds = array<i64: 1>, scalar_prefetch = 0 : i64, scratch_operands = 0 : i64, tpu.core_type = #tpu.core_type<tc>, window_params = [{transform_indices = @transform_0, window_bounds = array<i64: 3, 8>}, {transform_indices = @transform_1, window_bounds = array<i64: 8, 8>}, {pipeline_mode = #tpu.pipeline_mode<synchronous>, transform_indices = @transform_2, window_bounds = array<i64: 1, 136>}, {pipeline_mode = #tpu.pipeline_mode<synchronous>, transform_indices = @transform_3, window_bounds = array<i64: 1, 1>}, {transform_indices = @transform_4, window_bounds = array<i64: 1, 8>}]} {
    %c0 = arith.constant 0 : index
    %c0_0 = arith.constant 0 : index
    %0 = vector.load %arg1[%c0, %c0_0] : memref<3x8xi32, #tpu.memory_space<vmem>>, vector<3x8xi32>
    %1 = tpu.iota {dimensions = array<i32: 0>} : vector<128x8xi32>
    %2 = vector.extract_strided_slice %0 {offsets = [0, 0], sizes = [1, 8], strides = [1, 1]} : vector<3x8xi32> to vector<1x8xi32>
    %c0_i32 = arith.constant 0 : i32
    %3 = vector.broadcast %c0_i32 : i32 to vector<1x8xi32>
    %4 = arith.addi %2, %3 : vector<1x8xi32>
    %5 = vector.broadcast %4 : vector<1x8xi32> to vector<128x8xi32>
    %6 = arith.cmpi eq, %1, %5 : vector<128x8xi32>
    %7 = vector.extract_strided_slice %0 {offsets = [1, 0], sizes = [1, 8], strides = [1, 1]} : vector<3x8xi32> to vector<1x8xi32>
    %c10_i32 = arith.constant 10 : i32
    %8 = vector.broadcast %c10_i32 : i32 to vector<1x8xi32>
    %9 = arith.addi %7, %8 : vector<1x8xi32>
    %10 = vector.broadcast %9 : vector<1x8xi32> to vector<128x8xi32>
    %11 = arith.cmpi eq, %1, %10 : vector<128x8xi32>
    %12 = arith.ori %6, %11 : vector<128x8xi1>
    %13 = vector.extract_strided_slice %0 {offsets = [2, 0], sizes = [1, 8], strides = [1, 1]} : vector<3x8xi32> to vector<1x8xi32>
    %c20_i32 = arith.constant 20 : i32
    %14 = vector.broadcast %c20_i32 : i32 to vector<1x8xi32>
    %15 = arith.addi %13, %14 : vector<1x8xi32>
    %16 = vector.broadcast %15 : vector<1x8xi32> to vector<128x8xi32>
    %17 = arith.cmpi eq, %1, %16 : vector<128x8xi32>
    %18 = arith.ori %12, %17 : vector<128x8xi1>
    %19 = arith.extui %18 : vector<128x8xi1> to vector<128x8xi32>
    %20 = arith.sitofp %19 : vector<128x8xi32> to vector<128x8xf32>
    %c0_1 = arith.constant 0 : index
    %c0_2 = arith.constant 0 : index
    %21 = vector.load %arg2[%c0_1, %c0_2] : memref<8x8xf32, #tpu.memory_space<vmem>>, vector<8x8xf32>
    %22 = tpu.concatenate %20, %21 in 0 : vector<128x8xf32>, vector<8x8xf32> -> vector<136x8xf32>
    %c0_3 = arith.constant 0 : index
    %c0_4 = arith.constant 0 : index
    %23 = vector.load %arg3[%c0_3, %c0_4] : memref<1x136xf32, #tpu.memory_space<vmem>>, vector<1x136xf32>
    %cst = arith.constant dense<0.000000e+00> : vector<1x8xf32>
    %24 = tpu.matmul %23, %22, %cst {dimension_numbers = #tpu.dot_dimension_numbers<[1], [0], [0], [1], [0, 0, 1, 1], [], []>} : vector<1x136xf32>, vector<136x8xf32>, vector<1x8xf32> -> vector<1x8xf32>
    %c0_5 = arith.constant 0 : index
    %c0_6 = arith.constant 0 : index
    %25 = vector.load %arg4[%c0_5, %c0_6] : memref<1x1xf32, #tpu.memory_space<vmem>>, vector<1x1xf32>
    %26 = vector.broadcast %25 : vector<1x1xf32> to vector<1x8xf32>
    %27 = arith.addf %24, %26 : vector<1x8xf32>
    %c0_7 = arith.constant 0 : index
    %c0_8 = arith.constant 0 : index
    %28 = vector.load %arg5[%c0_7, %c0_8] : memref<1x8xf32, #tpu.memory_space<vmem>>, vector<1x8xf32>
    tpu.vector_store %arg5[%c0_7, %c0_8], %27 {strides = array<i32>} : memref<1x8xf32, #tpu.memory_space<vmem>>, vector<1x8xf32>,
    return
  }
  func.func @transform_0(%arg0: i32) -> (i32, i32) {
    %c0_i32 = arith.constant 0 : i32
    %c0_i32_0 = arith.constant 0 : i32
    return %c0_i32, %arg0 : i32, i32
  }
  func.func @transform_1(%arg0: i32) -> (i32, i32) {
    %c0_i32 = arith.constant 0 : i32
    %c0_i32_0 = arith.constant 0 : i32
    return %c0_i32, %arg0 : i32, i32
  }
  func.func @transform_2(%arg0: i32) -> (i32, i32) {
    %c0_i32 = arith.constant 0 : i32
    %c0_i32_0 = arith.constant 0 : i32
    %c0_i32_1 = arith.constant 0 : i32
    return %c0_i32, %c0_i32_0 : i32, i32
  }
  func.func @transform_3(%arg0: i32) -> (i32, i32) {
    %c0_i32 = arith.constant 0 : i32
    %c0_i32_0 = arith.constant 0 : i32
    %c0_i32_1 = arith.constant 0 : i32
    return %c0_i32, %c0_i32_0 : i32, i32
  }
  func.func @transform_4(%arg0: i32) -> (i32, i32) {
    %c0_i32 = arith.constant 0 : i32
    %c0_i32_0 = arith.constant 0 : i32
    return %c0_i32, %arg0 : i32, i32
  }
}

</mosaic_0001>

<bundles_post_ra>
// kernel: elasticnet_forward.1
= control target key start
LH: loop header
LB: loop body
LE: loop exit
PB: predicated region body
PF: predicated region fallthrough
CT: control target
= control target key end

     0   :  { %s518_s0 = inlined_call_operand.vmem [shape: s32[3,8], index: 0, kind: input, shape index: {}]   ;;  %s519_s1 = inlined_call_operand.vmem [shape: f32[8,8], index: 1, kind: input, shape index: {}]   ;;  %s520_s2 = inlined_call_operand.vmem [shape: f32[1,136], index: 2, kind: input, shape index: {}]   ;;  %s521_s3 = inlined_call_operand.<no memory space> [shape: f32[1,1], index: 3, kind: input, shape index: {}]   ;;  %s522_s4 = inlined_call_operand.hbm [shape: f32[1,8], index: 4, kind: output, shape index: {}]  }
   0x1   :  { %v9_v0 = vstv %s521_s3 }
   0x2   :  { %10 = vst [vmem:[#allocation2] sm:$0x1] %v9_v0 }
   0x3   :  { %v20_v1 = vld [vmem:[%s518_s0] sm:$0x7]  ;;  %v21_v2 = vlaneseq  ;;  %v362_v3 = vmov 0.0|0.0  }
   0x4   :  { %308 = vmatprep.subr.bf16.mxu0 %v362_v3  ;;  %v58_v4 = vadd.s32 10, %v20_v1  ;;  %v95_v5 = vadd.s32 20, %v20_v1 }
   0x5   :  { %v399_v6 = vshrl.u32 %v21_v2, 7 }
   0x9   :  { %v166_v7 = vld [vmem:[#allocation2] sm:$0x1] }
   0xa   :  { %11 = vsyncpa [#allocation4], 0  ;;  %v363_v8 = vmov 0   ;;  %v23_v9 = vadd.s32 8, %v399_v6  ;;  %v403_v10 = vsub.s32 0, %v399_v6  ;;  %v61_v11 = vsub.s32 1, %v399_v6 }
   0xb   :  { %337 = vset.pattern.permute.xlu0 %v363_v8  ;;  %v98_v12 = vsub.s32 2, %v399_v6  ;;  %v24_v16 = vadd.s32 16, %v399_v6  ;;  %v25_v17 = vadd.s32 24, %v399_v6  ;;  %v26_v18 = vadd.s32 32, %v399_v6  ;;  %v443_v22 = vld [vmem:[%s520_s2] sm:$0x3] }
   0xc   :  { %169 = vperm.xlu0 %337, %v166_v7   ;;  %v408_v13 = vrot.slane %v20_v1, %v403_v10  ;;  %v410_v14 = vrot.slane %v58_v4, %v61_v11  ;;  %v27_v19 = vadd.s32 40, %v399_v6  ;;  %v364_v20 = vmov 1.0|1.0   ;;  %v164_v34 = vld [vmem:[%s519_s1] sm:$0xff]  ;;  %s366_s20 = smov [#allocation3]  }
   0xd   :  { %v412_v15 = vrot.slane %v95_v5, %v98_v12  ;;  %v28_v21 = vadd.s32 48, %v399_v6  ;;  %v29_v23 = vadd.s32 56, %v399_v6  ;;  %v184_v24 = vrot.slane %v443_v22, %v61_v11  ;;  %s267_s21 = sshll.u32 %s366_s20, 4  ;;  %s268_s21 = int_to_ptr.vmem [resolvable:$true] %s267_s21 }
   0xe   :  { %vm42_vm0 = vcmp.eq.s32.totalorder %v399_v6, %v408_v13  ;;  %vm43_vm1 = vcmp.eq.s32.totalorder %v23_v9, %v408_v13  ;;  %vm63_vm2 = vcmp.eq.s32.totalorder %v399_v6, %v410_v14  ;;  %vm64_vm3 = vcmp.eq.s32.totalorder %v23_v9, %v410_v14  ;;  %s338_s22 = scalar_lea.vmem %s268_s21, 16  ;;  %s342_s23 = scalar_lea.vmem %s268_s21, 32 }
   0xf   :  { %vm79_vm4 = vmor %vm42_vm0, %vm63_vm2  ;;  %vm100_vm5 = vcmp.eq.s32.totalorder %v399_v6, %v412_v15  ;;  %vm101_vm6 = vcmp.eq.s32.totalorder %v23_v9, %v412_v15  ;;  %vm44_vm9 = vcmp.eq.s32.totalorder %v24_v16, %v408_v13  ;;  %vm65_vm10 = vcmp.eq.s32.totalorder %v24_v16, %v410_v14  ;;  %p339_p0 = scmp.ne.s32.totalorder %s268_s21, %s338_s22  ;;  %p343_p1 = scmp.lt.s32.totalorder %s268_s21, %s268_s21 }
  0x10   :  { %vm80_vm7 = vmor %vm43_vm1, %vm64_vm3  ;;  %vm45_vm12 = vcmp.eq.s32.totalorder %v25_v17, %v408_v13  ;;  %vm66_vm13 = vcmp.eq.s32.totalorder %v25_v17, %v410_v14  ;;  %vm102_vm15 = vcmp.eq.s32.totalorder %v24_v16, %v412_v15  ;;  %vm103_vm1 = vcmp.eq.s32.totalorder %v25_v17, %v412_v15  ;;  %p344_p2 = scmp.lt.s32.totalorder %s342_s23, %s338_s22 }
  0x11   :  { %vm116_vm8 = vmor %vm79_vm4, %vm100_vm5  ;;  %vm46_vm4 = vcmp.eq.s32.totalorder %v26_v18, %v408_v13  ;;  %vm67_vm5 = vcmp.eq.s32.totalorder %v26_v18, %v410_v14  ;;  %v30_v25 = vadd.s32 64, %v399_v6  ;;  %v31_v26 = vadd.s32 72, %v399_v6 }
  0x12   :  { %vm117_vm11 = vmor %vm80_vm7, %vm101_vm6  ;;  %vm47_vm7 = vcmp.eq.s32.totalorder %v27_v19, %v408_v13  ;;  %v32_v27 = vadd.s32 80, %v399_v6  ;;  %v33_v28 = vadd.s32 88, %v399_v6  ;;  %v34_v29 = vadd.s32 96, %v399_v6  ;;  %p345_p3 = por %p344_p2, %p343_p1 }
  0x13   :  { %vm309_vm14 = vmpackc.low %vm117_vm11, %vm116_vm8  ;;  %vm68_vm8 = vcmp.eq.s32.totalorder %v27_v19, %v410_v14  ;;  %v35_v30 = vadd.s32 104, %v399_v6  ;;  %v36_v31 = vadd.s32 112, %v399_v6  ;;  %v37_v32 = vadd.s32 120, %v399_v6 }
  0x14   :  { %310 = vmatpush1.bf16.msk.msra.mxu0 %vm309_vm14, %v364_v20  ;;  %vm81_vm0 = vmor %vm44_vm9, %vm65_vm10  ;;  %vm104_vm10 = vcmp.eq.s32.totalorder %v26_v18, %v412_v15  ;;  %v365_v33 = vmov 0.0   ;;  %v180_v35 = vrot.slane %v443_v22, %v403_v10  ;;  %p346_p4 = pnand %p345_p3, %p339_p0 }
  0x15   :  { %311 = vmatprep.subr.bf16.mxu0 %v362_v3  ;;  %vm82_vm2 = vmor %vm45_vm12, %vm66_vm13  ;;  %vm105_vm12 = vcmp.eq.s32.totalorder %v27_v19, %v412_v15  ;;  %vm186_vm13 = vcmask 64512  }
  0x16   :  { %vm118_vm3 = vmor %vm81_vm0, %vm102_vm15  ;;  %vm48_vm0 = vcmp.eq.s32.totalorder %v28_v21, %v408_v13  ;;  %307 = vmatprep.mubr.msk.f32.mxu0 %vm186_vm13, %v184_v24  ;;  %vm51_vm13 = vcmp.eq.s32.totalorder %v31_v26, %v408_v13 }
  0x17   :  { %vm119_vm6 = vmor %vm82_vm2, %vm103_vm1  ;;  %vm69_vm1 = vcmp.eq.s32.totalorder %v28_v21, %v410_v14 }
  0x18   :  { %vm312_vm9 = vmpackc.low %vm119_vm6, %vm118_vm3  ;;  %vm49_vm3 = vcmp.eq.s32.totalorder %v29_v23, %v408_v13  ;;  %vm70_vm6 = vcmp.eq.s32.totalorder %v29_v23, %v410_v14 }
  0x19   :  { %313 = vmatpush1.bf16.msk.msra.mxu0 %vm312_vm9, %v364_v20  ;;  %vm83_vm11 = vmor %vm46_vm4, %vm67_vm5  ;;  %vm106_vm5 = vcmp.eq.s32.totalorder %v28_v21, %v412_v15 }
  0x1a   :  { %314 = vmatprep.subr.bf16.mxu0 %v362_v3  ;;  %vm84_vm14 = vmor %vm47_vm7, %vm68_vm8  ;;  %vm107_vm8 = vcmp.eq.s32.totalorder %v29_v23, %v412_v15 }
  0x1b   :  { %vm120_vm15 = vmor %vm83_vm11, %vm104_vm10  ;;  %vm50_vm11 = vcmp.eq.s32.totalorder %v30_v25, %v408_v13 }
  0x1c   :  { %vm121_vm2 = vmor %vm84_vm14, %vm105_vm12  ;;  %vm71_vm12 = vcmp.eq.s32.totalorder %v30_v25, %v410_v14 }
  0x1d   :  { %vm315_vm4 = vmpackc.low %vm121_vm2, %vm120_vm15  ;;  %vm72_vm15 = vcmp.eq.s32.totalorder %v31_v26, %v410_v14 }
  0x1e   :  { %316 = vmatpush1.bf16.msk.msra.mxu0 %vm315_vm4, %v364_v20  ;;  %vm85_vm7 = vmor %vm48_vm0, %vm69_vm1  ;;  %vm108_vm0 = vcmp.eq.s32.totalorder %v30_v25, %v412_v15 }
  0x1f   :  { %317 = vmatprep.subr.bf16.mxu0 %v362_v3  ;;  %vm86_vm9 = vmor %vm49_vm3, %vm70_vm6  ;;  %vm109_vm3 = vcmp.eq.s32.totalorder %v31_v26, %v412_v15 }
  0x20   :  { %vm122_vm10 = vmor %vm85_vm7, %vm106_vm5  ;;  %vm52_vm5 = vcmp.eq.s32.totalorder %v32_v27, %v408_v13  ;;  %vm73_vm7 = vcmp.eq.s32.totalorder %v32_v27, %v410_v14 }
  0x21   :  { %vm123_vm14 = vmor %vm86_vm9, %vm107_vm8  ;;  %vm53_vm9 = vcmp.eq.s32.totalorder %v33_v28, %v408_v13 }
  0x22   :  { %vm318_vm2 = vmpackc.low %vm123_vm14, %vm122_vm10  ;;  %vm74_vm10 = vcmp.eq.s32.totalorder %v33_v28, %v410_v14 }
  0x23   :  { %319 = vmatpush1.bf16.msk.msra.mxu0 %vm318_vm2, %v364_v20  ;;  %vm87_vm1 = vmor %vm50_vm11, %vm71_vm12  ;;  %vm110_vm11 = vcmp.eq.s32.totalorder %v32_v27, %v412_v15 }
  0x24   :  { %320 = vmatprep.subr.bf16.mxu0 %v362_v3  ;;  %vm88_vm6 = vmor %vm51_vm13, %vm72_vm15  ;;  %vm111_vm13 = vcmp.eq.s32.totalorder %v33_v28, %v412_v15 }
  0x25   :  { %vm124_vm4 = vmor %vm87_vm1, %vm108_vm0  ;;  %vm54_vm0 = vcmp.eq.s32.totalorder %v34_v29, %v408_v13  ;;  %vm75_vm1 = vcmp.eq.s32.totalorder %v34_v29, %v410_v14 }
  0x26   :  { %vm125_vm8 = vmor %vm88_vm6, %vm109_vm3  ;;  %vm55_vm6 = vcmp.eq.s32.totalorder %v35_v30, %v408_v13 }
  0x27   :  { %vm321_vm14 = vmpackc.low %vm125_vm8, %vm124_vm4  ;;  %vm76_vm4 = vcmp.eq.s32.totalorder %v35_v30, %v410_v14 }
  0x28   :  { %322 = vmatpush1.bf16.msk.msra.mxu0 %vm321_vm14, %v364_v20  ;;  %vm89_vm12 = vmor %vm52_vm5, %vm73_vm7  ;;  %vm112_vm5 = vcmp.eq.s32.totalorder %v34_v29, %v412_v15 }
  0x29   :  { %323 = vmatprep.subr.bf16.mxu0 %v362_v3  ;;  %vm90_vm15 = vmor %vm53_vm9, %vm74_vm10  ;;  %vm113_vm9 = vcmp.eq.s32.totalorder %v35_v30, %v412_v15 }
  0x2a   :  { %vm126_vm2 = vmor %vm89_vm12, %vm110_vm11  ;;  %vm56_vm11 = vcmp.eq.s32.totalorder %v36_v31, %v408_v13  ;;  %vm77_vm12 = vcmp.eq.s32.totalorder %v36_v31, %v410_v14 }
  0x2b   :  { %vm127_vm3 = vmor %vm90_vm15, %vm111_vm13  ;;  %vm57_vm15 = vcmp.eq.s32.totalorder %v37_v32, %v408_v13 }
  0x2c   :  { %vm324_vm8 = vmpackc.low %vm127_vm3, %vm126_vm2  ;;  %vm78_vm2 = vcmp.eq.s32.totalorder %v37_v32, %v410_v14 }
  0x2d   :  { %325 = vmatpush1.bf16.msk.msra.mxu0 %vm324_vm8, %v364_v20  ;;  %vm91_vm7 = vmor %vm54_vm0, %vm75_vm1  ;;  %vm114_vm8 = vcmp.eq.s32.totalorder %v36_v31, %v412_v15  ;;  %vm115_vm1 = vcmp.eq.s32.totalorder %v37_v32, %v412_v15 }
  0x2e   :  { %326 = vmatprep.subr.bf16.mxu0 %v362_v3  ;;  %vm92_vm10 = vmor %vm55_vm6, %vm76_vm4 }
  0x2f   :  { %vm128_vm14 = vmor %vm91_vm7, %vm112_vm5 }
  0x30   :  { %vm129_vm13 = vmor %vm92_vm10, %vm113_vm9  ;;  %vm259_vm9 = vcmask 57344  }
  0x31   :  { %vm327_vm3 = vmpackc.low %vm129_vm13, %vm128_vm14 }
  0x32   :  { %328 = vmatpush1.bf16.msk.msra.mxu0 %vm327_vm3, %v364_v20  ;;  %vm93_vm0 = vmor %vm56_vm11, %vm77_vm12 }
  0x33   :  { %329 = vmatprep.subr.bf16.mxu0 %v362_v3  ;;  %vm94_vm6 = vmor %vm57_vm15, %vm78_vm2 }
  0x34   :  { %vm130_vm4 = vmor %vm93_vm0, %vm114_vm8 }
  0x35   :  { %vm131_vm5 = vmor %vm94_vm6, %vm115_vm1 }
  0x36   :  { %vm330_vm7 = vmpackc.low %vm131_vm5, %vm130_vm4 }
  0x37   :  { %331 = vmatpush1.bf16.msk.msra.mxu0 %vm330_vm7, %v364_v20 }
  0x38   :  { %221 = vmatprep.subr.mxu0 %v365_v33 }
  0x3b   :  { %222 = vmatpush1.msra.mxu0 %v164_v34 }
  0x3c   :  { %254 = vmatmul.mubr.f32.vlgmr.msra.gmra.mrb[0].mxu0 %v180_v35 }
  0x8b   :  { %v170_v36 = vpop.permute.xlu0 %169 }
  0x8c   :  { %v175_v37 = vrot.slane %v170_v36, %v403_v10 }
 0x10f   :  { %v255_v38 = vpop.f32.mrb[0].mxu0 }
 0x110   :  { %v256_v39 = vadd.f32 %v255_v38, %v175_v37  ;;  %v257_v40 = vpop.f32.mrb[1].mxu0 }
 0x112   :  { %260 = vst.msk [vmem:[#allocation3] sm:$0x1] %vm259_vm9, %v256_v39 }
 0x113   :  { %349 = shalt.err (!%p346_p4)
}
 0x114   :  { %s350_s25 = scalar_lea.hbm %s522_s4, 16 }
 0x115   :  { %p351_p5 = scmp.ne.s32.totalorder %s522_s4, %s350_s25  ;;  %p354_p6 = scmp.lt.u32.totalorder %s350_s25, %s522_s4 }
 0x117   :  { %p356_p7 = pnand %p354_p6, %p351_p5 }
 0x119   :  { %359 = shalt.err (!%p356_p7)
}
 0x11a   :  { %270 = dma.vmem_to_hbm [thread:$0]  %s268_s21, 16, %s522_s4, [#allocation4]  }
 0x11b   :  { %360 = dma.done.wait [#allocation4], 16  }
 0x11c   :  { %361 = vsyncadd [#allocation4], 4294967280 }
 0x11d   :  { %274 = vsyncpa [#allocation4], 1 }

</bundles_post_ra>
